<compile_context>
chip_gen: v6e
topology: v6e:2x2x1
jax: 0.10.0
libtpu: 0.0.40
codegen_flags: <defaults>
</compile_context>

<pallas_src>
import math
import jax
import jax.numpy as jnp
from jax.experimental import pallas as pl
from jax.experimental.pallas import tpu as pltpu

N_LAYERS = 4
H_DIM = 10
WL = 0.1206
SOURCE_POS = (0.0, 0.0)
_LOG10 = math.log(10.0)
_4PI = 4.0 * math.pi


def _round_up(v: int, m: int) -> int:
    return ((v + m - 1) // m) * m


def _pick_activation_dtype():
    """bf16 on v6e/v7x-class chips (packed bf16 VPU/EUP); f32 on v5-family."""
    try:
        kind = jax.devices()[0].device_kind.lower()
    except Exception:  # pragma: no cover
        kind = ""
    return jnp.float32 if "v5" in kind else jnp.bfloat16


def _make_kernel(n_sigmoid_layers: int, apply_ploss: bool, act_dtype):
    """Kernel body.  Ref order: xp_ref, (w, b) * (2 + n_sigmoid_layers), out_ref.

    xp_ref:  (2, TN)  rows [r; theta]      (f32)
    w refs:  (out, in)  layer 0 in f32, hidden/last in act_dtype
    b refs:  (out, 1)   f32
    out_ref: (1, TN)    f32
    """

    def kernel(*refs):
        xp_ref = refs[0]
        out_ref = refs[-1]
        prefs = refs[1:-1]

        xp = xp_ref[...]                                   # (2, TN) f32

        # layer 0: ReLU(W0 @ xp + b0), f32 accumulate, then cast activations.
        w0 = prefs[0][...]                                 # (h, 2)
        b0 = prefs[1][...]                                 # (h, 1)
        h = jnp.dot(w0, xp, preferred_element_type=jnp.float32) + b0
        h = jnp.maximum(h, 0.0).astype(act_dtype)          # (h, TN)

        # layers 1 .. n_layers-2: Sigmoid(W @ h + b), sigmoid via single tanh.
        idx = 2
        for _ in range(n_sigmoid_layers):
            w = prefs[idx][...]                            # (h, h) act_dtype
            b = prefs[idx + 1][...]                        # (h, 1) f32
            z = jnp.dot(w, h, preferred_element_type=jnp.float32) + b
            z = (0.5 * z).astype(act_dtype)
            h = jnp.tanh(z) * 0.5 + 0.5                    # sigmoid(z), 1 EUP push
            idx += 2

        # last layer: W_last @ h + b_last -> (1, TN), f32
        w = prefs[idx][...]                                # (1, h) act_dtype
        b = prefs[idx + 1][...]                            # (1, 1) f32
        out = jnp.dot(w, h, preferred_element_type=jnp.float32) + b

        if apply_ploss:
            r = xp[0:1, :]                                 # (1, TN)
            fs = (-20.0 / _LOG10) * jnp.log((_4PI / WL) * r)  # -20*log10(4*pi*r/wl)
            out = out + fs

        out_ref[...] = out.astype(out_ref.dtype)

    return kernel


def radio_rssi_regressor(x, params, *, apply_ploss=True, tn=2048,
                         activation_dtype=None):
    """x: (N, 2) cartesian float32.
    params: list of (W[out,in], b[out]) for the layers actually used by
    forward(): [layer0, layer1..layer_{n_layers-2}, layer_last]."""
    assert tn >= 128 and tn % 128 == 0, "row tile must be a multiple of 128"
    if activation_dtype is None:
        activation_dtype = _pick_activation_dtype()

    x = jnp.asarray(x, jnp.float32)
    n = x.shape[0]

    # xy2rt: cartesian -> polar, produced directly lane-dense as (2, N).
    # TODO(synk): arctan2 has no guaranteed Mosaic lowering, so the tiny polar
    # transform stays in JAX glue; the MLP / log10 / add hot path is in-kernel.
    dx = x[:, 0] - SOURCE_POS[0]
    dy = x[:, 1] - SOURCE_POS[1]
    r = jnp.sqrt(dx * dx + dy * dy)
    theta = jnp.arctan2(dy, dx)
    xp = jnp.stack((r, theta), axis=0)                     # (2, N)

    # Tile / pad so the lane dim is 128-aligned and divisible by the tile.
    tn_eff = min(tn, _round_up(n, 128))
    n_pad = _round_up(n, tn_eff)
    if n_pad != n:
        # r = 1 in padded lanes keeps the log finite; padded lanes are sliced off.
        xp = jnp.pad(xp, ((0, 0), (0, n_pad - n)), constant_values=1.0)

    grid = (n_pad // tn_eff,)

    in_specs = [pl.BlockSpec((2, tn_eff), lambda i: (0, i))]
    flat_params = []
    for li, (w, b) in enumerate(params):
        wdt = jnp.float32 if li == 0 else activation_dtype
        wa = jnp.asarray(w, jnp.float32).astype(wdt)       # (out, in) — no transpose
        ba = jnp.asarray(b, jnp.float32).reshape(-1, 1)    # (out, 1)
        flat_params += [wa, ba]
        in_specs += [
            pl.BlockSpec(wa.shape, lambda i: (0, 0)),      # full weight resident in VMEM
            pl.BlockSpec(ba.shape, lambda i: (0, 0)),
        ]

    kernel = _make_kernel(n_sigmoid_layers=len(params) - 2,
                          apply_ploss=apply_ploss,
                          act_dtype=activation_dtype)

    out = pl.pallas_call(
        kernel,
        out_shape=jax.ShapeDtypeStruct((1, n_pad), jnp.float32),
        grid=grid,
        in_specs=in_specs,
        out_specs=pl.BlockSpec((1, tn_eff), lambda i: (0, i)),
        compiler_params=pltpu.CompilerParams(dimension_semantics=("parallel",)),
    )(xp, *flat_params)

    return out[0, :n].reshape(n, 1)


def init_params(key, n_layers=N_LAYERS, h_dim=H_DIM):
    """Deterministic PyTorch-style Linear init (uniform +/- 1/sqrt(fan_in)) for the
    layers used by forward(): indices 0, 1..n_layers-2, and -1 of the ModuleList."""
    dims = [(2, h_dim)] + [(h_dim, h_dim)] * n_layers + [(h_dim, 1)]
    used = [0] + list(range(1, n_layers - 1)) + [len(dims) - 1]
    params = []
    for li in used:
        fan_in, fan_out = dims[li]
        key, kw, kb = jax.random.split(key, 3)
        bound = 1.0 / math.sqrt(fan_in)
        w = jax.random.uniform(kw, (fan_out, fan_in), jnp.float32, -bound, bound)
        b = jax.random.uniform(kb, (fan_out,), jnp.float32, -bound, bound)
        params.append((w, b))
    return params


def reference_forward(x, params, apply_ploss=True):
    """Pure-JAX reference mirroring the PyTorch forward."""
    hp = jax.lax.Precision.HIGHEST
    dx = x[:, 0] - SOURCE_POS[0]
    dy = x[:, 1] - SOURCE_POS[1]
    r = jnp.sqrt(dx * dx + dy * dy)
    theta = jnp.arctan2(dy, dx)
    xp = jnp.stack((r, theta), axis=1)

    w, b = params[0]
    h = jax.nn.relu(jnp.dot(xp, w.T, precision=hp) + b)
    for (w, b) in params[1:-1]:
        h = jax.nn.sigmoid(jnp.dot(h, w.T, precision=hp) + b)
    w, b = params[-1]
    out = jnp.dot(h, w.T, precision=hp) + b                 # (N, 1)
    fs = (-20.0 * jnp.log10(_4PI * r / WL)).reshape(out.shape)  # resize_as_ == reshape here
    return fs + out if apply_ploss else out


if __name__ == "__main__":
    key = jax.random.PRNGKey(0)
    k_x, k_x2, k_p = jax.random.split(key, 3)

    params = init_params(k_p)

    # 1) Small batch, f32 activations, strict check vs. the JAX reference.
    x = jax.random.uniform(k_x, (256, 2), jnp.float32, minval=1.0, maxval=20.0)
    y = jax.block_until_ready(
        radio_rssi_regressor(x, params, apply_ploss=True,
                             activation_dtype=jnp.float32))
    y_ref = reference_forward(x, params, apply_ploss=True)
    assert y.shape == (256, 1)
    assert jnp.allclose(y, y_ref, rtol=1e-3, atol=5e-2), (
        float(jnp.max(jnp.abs(y - y_ref))))

    # 2) apply_ploss=False branch, f32.
    y_np = jax.block_until_ready(
        radio_rssi_regressor(x, params, apply_ploss=False,
                             activation_dtype=jnp.float32))
    y_np_ref = reference_forward(x, params, apply_ploss=False)
    assert jnp.allclose(y_np, y_np_ref, rtol=1e-3, atol=5e-2), (
        float(jnp.max(jnp.abs(y_np - y_np_ref))))

    # 3) Non-multiple-of-128 N (exercises lane padding) with the auto-selected
    #    activation dtype (bf16 on v6e/v7x) -> looser tolerance.
    x2 = jax.random.uniform(k_x2, (300, 2), jnp.float32, minval=1.0, maxval=20.0)
    y2 = jax.block_until_ready(radio_rssi_regressor(x2, params, apply_ploss=True))
    y2_ref = reference_forward(x2, params, apply_ploss=True)
    assert y2.shape == (300, 1)
    assert jnp.allclose(y2, y2_ref, rtol=1e-2, atol=2e-1), (
        float(jnp.max(jnp.abs(y2 - y2_ref))))

    print("KERNEL_OK")
</pallas_src>

<mosaic_0001>
module attributes {stable_mosaic.version = 11 : i64} {
  func.func @kernel(%arg0: i32, %arg1: memref<2x256xf32, #tpu.memory_space<vmem>>, %arg2: memref<10x2xf32, #tpu.memory_space<vmem>>, %arg3: memref<10x1xf32, #tpu.memory_space<vmem>>, %arg4: memref<10x10xf32, #tpu.memory_space<vmem>>, %arg5: memref<10x1xf32, #tpu.memory_space<vmem>>, %arg6: memref<10x10xf32, #tpu.memory_space<vmem>>, %arg7: memref<10x1xf32, #tpu.memory_space<vmem>>, %arg8: memref<1x10xf32, #tpu.memory_space<vmem>>, %arg9: memref<1x1xf32, #tpu.memory_space<vmem>>, %arg10: memref<1x256xf32, #tpu.memory_space<vmem>>) attributes {dimension_semantics = [#tpu.dimension_semantics<parallel>], iteration_bounds = array<i64: 1>, scalar_prefetch = 0 : i64, scratch_operands = 0 : i64, tpu.core_type = #tpu.core_type<tc>, window_params = [{transform_indices = @transform_0, window_bounds = array<i64: 2, 256>}, {pipeline_mode = #tpu.pipeline_mode<synchronous>, transform_indices = @transform_1, window_bounds = array<i64: 10, 2>}, {pipeline_mode = #tpu.pipeline_mode<synchronous>, transform_indices = @transform_2, window_bounds = array<i64: 10, 1>}, {pipeline_mode = #tpu.pipeline_mode<synchronous>, transform_indices = @transform_3, window_bounds = array<i64: 10, 10>}, {pipeline_mode = #tpu.pipeline_mode<synchronous>, transform_indices = @transform_4, window_bounds = array<i64: 10, 1>}, {pipeline_mode = #tpu.pipeline_mode<synchronous>, transform_indices = @transform_5, window_bounds = array<i64: 10, 10>}, {pipeline_mode = #tpu.pipeline_mode<synchronous>, transform_indices = @transform_6, window_bounds = array<i64: 10, 1>}, {pipeline_mode = #tpu.pipeline_mode<synchronous>, transform_indices = @transform_7, window_bounds = array<i64: 1, 10>}, {pipeline_mode = #tpu.pipeline_mode<synchronous>, transform_indices = @transform_8, window_bounds = array<i64: 1, 1>}, {transform_indices = @transform_9, window_bounds = array<i64: 1, 256>}]} {
    %c0 = arith.constant 0 : index
    %c0_0 = arith.constant 0 : index
    %0 = vector.load %arg1[%c0, %c0_0] : memref<2x256xf32, #tpu.memory_space<vmem>>, vector<2x256xf32>
    %c0_1 = arith.constant 0 : index
    %c0_2 = arith.constant 0 : index
    %1 = vector.load %arg2[%c0_1, %c0_2] : memref<10x2xf32, #tpu.memory_space<vmem>>, vector<10x2xf32>
    %c0_3 = arith.constant 0 : index
    %c0_4 = arith.constant 0 : index
    %2 = vector.load %arg3[%c0_3, %c0_4] : memref<10x1xf32, #tpu.memory_space<vmem>>, vector<10x1xf32>
    %cst = arith.constant dense<0.000000e+00> : vector<10x256xf32>
    %3 = tpu.matmul %1, %0, %cst {dimension_numbers = #tpu.dot_dimension_numbers<[1], [0], [0], [1], [0, 0, 1, 1], [], []>} : vector<10x2xf32>, vector<2x256xf32>, vector<10x256xf32> -> vector<10x256xf32>
    %4 = vector.broadcast %2 : vector<10x1xf32> to vector<10x256xf32>
    %5 = arith.addf %3, %4 : vector<10x256xf32>
    %cst_5 = arith.constant 0.000000e+00 : f32
    %6 = vector.broadcast %cst_5 : f32 to vector<10x256xf32>
    %7 = arith.maximumf %5, %6 : vector<10x256xf32>
    %c0_6 = arith.constant 0 : index
    %c0_7 = arith.constant 0 : index
    %8 = vector.load %arg4[%c0_6, %c0_7] : memref<10x10xf32, #tpu.memory_space<vmem>>, vector<10x10xf32>
    %c0_8 = arith.constant 0 : index
    %c0_9 = arith.constant 0 : index
    %9 = vector.load %arg5[%c0_8, %c0_9] : memref<10x1xf32, #tpu.memory_space<vmem>>, vector<10x1xf32>
    %cst_10 = arith.constant dense<0.000000e+00> : vector<10x256xf32>
    %10 = tpu.matmul %8, %7, %cst_10 {dimension_numbers = #tpu.dot_dimension_numbers<[1], [0], [0], [1], [0, 0, 1, 1], [], []>} : vector<10x10xf32>, vector<10x256xf32>, vector<10x256xf32> -> vector<10x256xf32>
    %11 = vector.broadcast %9 : vector<10x1xf32> to vector<10x256xf32>
    %12 = arith.addf %10, %11 : vector<10x256xf32>
    %cst_11 = arith.constant 5.000000e-01 : f32
    %13 = vector.broadcast %cst_11 : f32 to vector<10x256xf32>
    %14 = arith.mulf %13, %12 : vector<10x256xf32>
    %15 = math.tanh %14 : vector<10x256xf32>
    %cst_12 = arith.constant 5.000000e-01 : f32
    %16 = vector.broadcast %cst_12 : f32 to vector<10x256xf32>
    %17 = arith.mulf %15, %16 : vector<10x256xf32>
    %cst_13 = arith.constant 5.000000e-01 : f32
    %18 = vector.broadcast %cst_13 : f32 to vector<10x256xf32>
    %19 = arith.addf %17, %18 : vector<10x256xf32>
    %c0_14 = arith.constant 0 : index
    %c0_15 = arith.constant 0 : index
    %20 = vector.load %arg6[%c0_14, %c0_15] : memref<10x10xf32, #tpu.memory_space<vmem>>, vector<10x10xf32>
    %c0_16 = arith.constant 0 : index
    %c0_17 = arith.constant 0 : index
    %21 = vector.load %arg7[%c0_16, %c0_17] : memref<10x1xf32, #tpu.memory_space<vmem>>, vector<10x1xf32>
    %cst_18 = arith.constant dense<0.000000e+00> : vector<10x256xf32>
    %22 = tpu.matmul %20, %19, %cst_18 {dimension_numbers = #tpu.dot_dimension_numbers<[1], [0], [0], [1], [0, 0, 1, 1], [], []>} : vector<10x10xf32>, vector<10x256xf32>, vector<10x256xf32> -> vector<10x256xf32>
    %23 = vector.broadcast %21 : vector<10x1xf32> to vector<10x256xf32>
    %24 = arith.addf %22, %23 : vector<10x256xf32>
    %cst_19 = arith.constant 5.000000e-01 : f32
    %25 = vector.broadcast %cst_19 : f32 to vector<10x256xf32>
    %26 = arith.mulf %25, %24 : vector<10x256xf32>
    %27 = math.tanh %26 : vector<10x256xf32>
    %cst_20 = arith.constant 5.000000e-01 : f32
    %28 = vector.broadcast %cst_20 : f32 to vector<10x256xf32>
    %29 = arith.mulf %27, %28 : vector<10x256xf32>
    %cst_21 = arith.constant 5.000000e-01 : f32
    %30 = vector.broadcast %cst_21 : f32 to vector<10x256xf32>
    %31 = arith.addf %29, %30 : vector<10x256xf32>
    %c0_22 = arith.constant 0 : index
    %c0_23 = arith.constant 0 : index
    %32 = vector.load %arg8[%c0_22, %c0_23] : memref<1x10xf32, #tpu.memory_space<vmem>>, vector<1x10xf32>
    %c0_24 = arith.constant 0 : index
    %c0_25 = arith.constant 0 : index
    %33 = vector.load %arg9[%c0_24, %c0_25] : memref<1x1xf32, #tpu.memory_space<vmem>>, vector<1x1xf32>
    %cst_26 = arith.constant dense<0.000000e+00> : vector<1x256xf32>
    %34 = tpu.matmul %32, %31, %cst_26 {dimension_numbers = #tpu.dot_dimension_numbers<[1], [0], [0], [1], [0, 0, 1, 1], [], []>} : vector<1x10xf32>, vector<10x256xf32>, vector<1x256xf32> -> vector<1x256xf32>
    %35 = vector.broadcast %33 : vector<1x1xf32> to vector<1x256xf32>
    %36 = arith.addf %34, %35 : vector<1x256xf32>
    %37 = vector.extract_strided_slice %0 {offsets = [0, 0], sizes = [1, 256], strides = [1, 1]} : vector<2x256xf32> to vector<1x256xf32>
    %cst_27 = arith.constant 104.198761 : f32
    %38 = vector.broadcast %cst_27 : f32 to vector<1x256xf32>
    %39 = arith.mulf %38, %37 : vector<1x256xf32>
    %40 = math.log %39 : vector<1x256xf32>
    %cst_28 = arith.constant -8.68588924 : f32
    %41 = vector.broadcast %cst_28 : f32 to vector<1x256xf32>
    %42 = arith.mulf %41, %40 : vector<1x256xf32>
    %43 = arith.addf %36, %42 : vector<1x256xf32>
    %c0_29 = arith.constant 0 : index
    %c0_30 = arith.constant 0 : index
    %44 = vector.load %arg10[%c0_29, %c0_30] : memref<1x256xf32, #tpu.memory_space<vmem>>, vector<1x256xf32>
    tpu.vector_store %arg10[%c0_29, %c0_30], %43 {strides = array<i32>} : memref<1x256xf32, #tpu.memory_space<vmem>>, vector<1x256xf32>,
    return
  }
  func.func @transform_0(%arg0: i32) -> (i32, i32) {
    %c0_i32 = arith.constant 0 : i32
    %c0_i32_0 = arith.constant 0 : i32
    return %c0_i32, %arg0 : i32, i32
  }
  func.func @transform_1(%arg0: i32) -> (i32, i32) {
    %c0_i32 = arith.constant 0 : i32
    %c0_i32_0 = arith.constant 0 : i32
    %c0_i32_1 = arith.constant 0 : i32
    return %c0_i32, %c0_i32_0 : i32, i32
  }
  func.func @transform_2(%arg0: i32) -> (i32, i32) {
    %c0_i32 = arith.constant 0 : i32
    %c0_i32_0 = arith.constant 0 : i32
    %c0_i32_1 = arith.constant 0 : i32
    return %c0_i32, %c0_i32_0 : i32, i32
  }
  func.func @transform_3(%arg0: i32) -> (i32, i32) {
    %c0_i32 = arith.constant 0 : i32
    %c0_i32_0 = arith.constant 0 : i32
    %c0_i32_1 = arith.constant 0 : i32
    return %c0_i32, %c0_i32_0 : i32, i32
  }
  func.func @transform_4(%arg0: i32) -> (i32, i32) {
    %c0_i32 = arith.constant 0 : i32
    %c0_i32_0 = arith.constant 0 : i32
    %c0_i32_1 = arith.constant 0 : i32
    return %c0_i32, %c0_i32_0 : i32, i32
  }
  func.func @transform_5(%arg0: i32) -> (i32, i32) {
    %c0_i32 = arith.constant 0 : i32
    %c0_i32_0 = arith.constant 0 : i32
    %c0_i32_1 = arith.constant 0 : i32
    return %c0_i32, %c0_i32_0 : i32, i32
  }
  func.func @transform_6(%arg0: i32) -> (i32, i32) {
    %c0_i32 = arith.constant 0 : i32
    %c0_i32_0 = arith.constant 0 : i32
    %c0_i32_1 = arith.constant 0 : i32
    return %c0_i32, %c0_i32_0 : i32, i32
  }
  func.func @transform_7(%arg0: i32) -> (i32, i32) {
    %c0_i32 = arith.constant 0 : i32
    %c0_i32_0 = arith.constant 0 : i32
    %c0_i32_1 = arith.constant 0 : i32
    return %c0_i32, %c0_i32_0 : i32, i32
  }
  func.func @transform_8(%arg0: i32) -> (i32, i32) {
    %c0_i32 = arith.constant 0 : i32
    %c0_i32_0 = arith.constant 0 : i32
    %c0_i32_1 = arith.constant 0 : i32
    return %c0_i32, %c0_i32_0 : i32, i32
  }
  func.func @transform_9(%arg0: i32) -> (i32, i32) {
    %c0_i32 = arith.constant 0 : i32
    %c0_i32_0 = arith.constant 0 : i32
    return %c0_i32, %arg0 : i32, i32
  }
}

</mosaic_0001>

<bundles_post_ra>
// kernel: tpu_custom_call.1
= control target key start
LH: loop header
LB: loop body
LE: loop exit
PB: predicated region body
PF: predicated region fallthrough
CT: control target
= control target key end

     0   :  { %s733_s0 = inlined_call_operand.vmem [shape: f32[2,256], index: 0, kind: input, shape index: {}]   ;;  %s734_s1 = inlined_call_operand.vmem [shape: f32[10,2], index: 1, kind: input, shape index: {}]   ;;  %s735_s2 = inlined_call_operand.vmem [shape: f32[10,1], index: 2, kind: input, shape index: {}]   ;;  %s736_s3 = inlined_call_operand.vmem [shape: f32[10,10], index: 3, kind: input, shape index: {}]   ;;  %s737_s4 = inlined_call_operand.vmem [shape: f32[10,1], index: 4, kind: input, shape index: {}]   ;;  %s738_s5 = inlined_call_operand.vmem [shape: f32[10,10], index: 5, kind: input, shape index: {}]   ;;  %s739_s6 = inlined_call_operand.vmem [shape: f32[10,1], index: 6, kind: input, shape index: {}]   ;;  %s740_s7 = inlined_call_operand.vmem [shape: f32[1,10], index: 7, kind: input, shape index: {}]   ;;  %s741_s8 = inlined_call_operand.<no memory space> [shape: f32[1,1], index: 8, kind: input, shape index: {}]   ;;  %s742_s9 = inlined_call_operand.hbm [shape: f32[1,256], index: 9, kind: output, shape index: {}]  }
   0x1   :  { %v14_v0 = vstv %s741_s8 }
   0x2   :  { %15 = vst [vmem:[#allocation2] sm:$0x1] %v14_v0 }
   0x3   :  { %v54_v1 = vlaneseq  ;;  %v598_v2 = vmov 1983009808   ;;  %v599_v4 = vmov 0.0   ;;  %v39_v6 = vld [vmem:[%s735_s2 + $0x8] sm:$0x3]  ;;  %v600_v8 = vmov 0  }
   0x4   :  { %v52_v3 = vunpack.c.l.s4 %v598_v2  ;;  %135 = vmatprep.mubr.f32.mxu0 %v599_v4  ;;  %243 = vmatprep.mubr.f32.mxu1 %v599_v4 }
   0x5   :  { %v659_v5 = vshrl.u32 %v54_v1, 7  ;;  %556 = vset.pattern.permute.xlu0 %v600_v8  ;;  %557 = vset.pattern.permute.xlu1 %v600_v8 }
   0x6   :  { %v53_v7 = vunpack.c.0.s8 %v52_v3 }
   0x7   :  { %16 = vsyncpa [#allocation4], 0  ;;  %v667_v9 = vld [vmem:[%s733_s0] sm:$0xf]  ;;  %47 = vperm.xlu0 %556, %v39_v6   ;;  %vm66_vm0 = vcmask 1041408   ;;  %vm59_vm1 = vcmask 15360  }
   0x8   :  { %v56_v10 = vsub.s32 %v53_v7, %v659_v5  ;;  %v38_v11 = vld [vmem:[%s735_s2] sm:$0xff]  ;;  %v275_v14 = vld [vmem:[%s739_s6 + $0x8] sm:$0x3]  ;;  %vm166_vm2 = vcmask 80896   ;;  %vm519_vm3 = vcmp.lt.s32.totalorder %v54_v1, 256 }
   0x9   :  { %v36_v15 = vld [vmem:[%s734_s1] sm:$0xff]  ;;  %v37_v17 = vld [vmem:[%s734_s1 + $0x8] sm:$0x3] }
   0xa   :  { %v57_v12 = vrot.slane %v667_v9, %v56_v10  ;;  %v392_v16 = vld [vmem:[#allocation2] sm:$0x1]  ;;  %v155_v18 = vld [vmem:[%s737_s4 + $0x8] sm:$0x3] }
   0xb   :  { %42 = vperm.xlu0 %556, %v38_v11   ;;  %163 = vperm.xlu1 %557, %v155_v18   ;;  %v154_v19 = vld [vmem:[%s737_s4] sm:$0xff]  ;;  %v153_v36 = vld [vmem:[%s736_s3 + $0x8] sm:$0x3] }
   0xc   :  { %v58_v13 = vcombine.high %v57_v12, %v57_v12  ;;  %v274_v20 = vld [vmem:[%s739_s6] sm:$0xff]  ;;  %v273_v0 = vld [vmem:[%s738_s5 + $0x8] sm:$0x3] }
   0xd   :  { %v152_v35 = vld [vmem:[%s736_s3] sm:$0xff] }
   0xe   :  { %536 = vmatprep.subr.msk.mxu0 %vm66_vm0, %v58_v13  ;;  %v272_v63 = vld [vmem:[%s738_s5] sm:$0xff] }
   0xf   :  { %537 = vmatpush1.msk.msra.mxu0 %vm66_vm0, %v57_v12  ;;  %283 = vperm.xlu0 %556, %v275_v14  }
  0x10   :  { %538 = vmatmul.mubr.msk.f32.vlgmr.msra.gmra.mxu0 %vm59_vm1, %v36_v15  ;;  %158 = vperm.xlu1 %557, %v154_v19  }
  0x11   :  { %141 = vmatprep.mubr.f32.mxu0 %v599_v4 }
  0x13   :  { %395 = vperm.xlu0 %556, %v392_v16  }
  0x14   :  { %539 = vmatmul.mubr.msk.f32.gmra.mxu0 %vm59_vm1, %v37_v17  ;;  %278 = vperm.xlu1 %557, %v274_v20  }
  0x15   :  { %362 = vmatprep.mubr.f32.mxu0 %v599_v4 }
  0x82   :  { %v48_v21 = vpop.permute.xlu0 %47 }
  0x86   :  { %v43_v25 = vpop.permute.xlu0 %42  ;;  %v164_v37 = vpop.permute.xlu1 %163 }
  0x8a   :  { %v284_v10 = vpop.permute.xlu0 %283 }
  0x8b   :  { %v159_v38 = vpop.permute.xlu1 %158 }
  0x8f   :  { %v279_v3 = vpop.permute.xlu1 %278 }
  0xd0   :  { %v137_v22 = vpop.f32.mrf.mxu0 }
  0xd1   :  { %v138_v30 = vadd.f32 %v137_v22, %v43_v25 }
  0xd2   :  { %v139_v23 = vpop.f32.mrf.mxu0 }
  0xd3   :  { %v140_v28 = vadd.f32 %v139_v23, %v43_v25  ;;  %v148_v34 = vmax.f32 %v138_v30, 0.0  ;;  %v391_v30 = vld [vmem:[%s740_s7] sm:$0x1]  ;;  %s602_s7 = smov [#allocation3]  }
  0xd4   :  { %v143_v24 = vpop.f32.mrf.mxu0  ;;  %s528_s10 = sshll.u32 %s602_s7, 4  ;;  %s529_s10 = int_to_ptr.vmem [resolvable:$true] %s528_s10 }
  0xd5   :  { %v144_v26 = vadd.f32 %v143_v24, %v48_v21  ;;  %v149_v33 = vmax.f32 %v140_v28, 0.0  ;;  %s576_s11 = scalar_lea.vmem %s529_s10, 32  ;;  %p581_p1 = scmp.lt.s32.totalorder %s529_s10, %s529_s10 }
  0xd6   :  { %v145_v27 = vpop.f32.mrf.mxu0  ;;  %p577_p0 = scmp.ne.s32.totalorder %s529_s10, %s576_s11  ;;  %p582_p2 = scmp.lt.s32.totalorder %s576_s11, %s576_s11 }
  0xd7   :  { %v146_v29 = vadd.f32 %v145_v27, %v48_v21  ;;  %v150_v32 = vmax.f32 %v144_v26, 0.0 }
  0xd8   :  { %p583_p3 = por %p582_p2, %p581_p1 }
  0xd9   :  { %v151_v31 = vmax.f32 %v146_v29, 0.0 }
  0xda   :  { %p584_p4 = pnand %p583_p3, %p577_p0 }
  0xdb   :  { %540 = vmatprep.subr.msk.mxu1 %vm66_vm0, %v151_v31  ;;  %v482_v31 = vmul.f32 104.19876, %v667_v9 }
  0xdc   :  { %541 = vmatpush1.msk.msra.mxu1 %vm66_vm0, %v150_v32 }
  0xdd   :  { %209 = vmatprep.subr.mxu1 %v149_v33 }
  0xde   :  { %210 = vmatpush1.msra.mxu1 %v148_v34  ;;  %v400_v34 = vsub.s32 0, %v659_v5 }
  0xdf   :  { %542 = vmatmul.mubr.msk.f32.vlgmr.msra.gmra.mxu1 %vm166_vm2, %v152_v35  ;;  %v396_v35 = vpop.permute.xlu0 %395 }
  0xe0   :  { %249 = vmatprep.mubr.f32.mxu1 %v599_v4 }
  0xe3   :  { %543 = vmatmul.mubr.msk.f32.gmra.mxu1 %vm166_vm2, %v153_v36 }
  0xe4   :  { %475 = vmatprep.mubr.f32.mxu1 %v599_v4 }
 0x19f   :  { %v245_v39 = vpop.f32.mrf.mxu1 }
 0x1a0   :  { %v246_v40 = vadd.f32 %v245_v39, %v159_v38 }
 0x1a1   :  { %v247_v41 = vpop.f32.mrf.mxu1 }
 0x1a2   :  { %v248_v42 = vadd.f32 %v247_v41, %v159_v38  ;;  %v256_v46 = vmul.f32 0.5, %v246_v40  ;;  %v601_v38 = vmov 1966171168   ;;  %v401_v40 = vrot.slane %v396_v35, %v400_v34 }
 0x1a3   :  { %v251_v43 = vpop.f32.mrf.mxu1  ;;  %v503_v39 = vunpack.c.l.s4 %v601_v38 }
 0x1a4   :  { %v257_v44 = vmul.f32 0.5, %v248_v42  ;;  %v252_v45 = vadd.f32 %v251_v43, %v164_v37 }
 0x1a5   :  { %v253_v47 = vpop.f32.mrf.mxu1 }
 0x1a6   :  { %v258_v48 = vmul.f32 0.5, %v252_v45  ;;  %v254_v49 = vadd.f32 %v253_v47, %v164_v37  ;;  %558 = vtanh.f32 %v257_v44  ;;  %v493_v37 = vsub.s32 2, %v659_v5 }
 0x1a7   :  { %v504_v45 = vunpack.c.0.s8 %v503_v39 }
 0x1a8   :  { %560 = vtanh.f32 %v258_v48  ;;  %v259_v50 = vmul.f32 0.5, %v254_v49 }
 0x1a9   :  { %562 = vtanh.f32 %v256_v46  ;;  %v507_v49 = vsub.s32 %v504_v45, %v659_v5 }
 0x1aa   :  { %564 = vtanh.f32 %v259_v50 }
 0x1b3   :  { %v559_v51 = vpop.eup %558 }
 0x1b4   :  { %v265_v57 = vmul.f32 0.5, %v559_v51 }
 0x1b5   :  { %v561_v52 = vpop.eup %560 }
 0x1b6   :  { %v563_v53 = vpop.eup %562  ;;  %v266_v55 = vmul.f32 0.5, %v561_v52  ;;  %v269_v61 = vadd.f32 0.5, %v265_v57 }
 0x1b7   :  { %v565_v54 = vpop.eup %564  ;;  %v264_v58 = vmul.f32 0.5, %v563_v53 }
 0x1b8   :  { %v267_v56 = vmul.f32 0.5, %v565_v54  ;;  %v270_v60 = vadd.f32 0.5, %v266_v55 }
 0x1b9   :  { %v268_v62 = vadd.f32 0.5, %v264_v58 }
 0x1ba   :  { %v271_v59 = vadd.f32 0.5, %v267_v56 }
 0x1bc   :  { %544 = vmatprep.subr.msk.mxu0 %vm66_vm0, %v271_v59 }
 0x1bd   :  { %545 = vmatpush1.msk.msra.mxu0 %vm66_vm0, %v270_v60 }
 0x1be   :  { %328 = vmatprep.subr.mxu0 %v269_v61 }
 0x1bf   :  { %329 = vmatpush1.msra.mxu0 %v268_v62 }
 0x1c0   :  { %546 = vmatmul.mubr.msk.f32.vlgmr.msra.gmra.mxu0 %vm166_vm2, %v272_v63 }
 0x1c1   :  { %368 = vmatprep.mubr.f32.mxu0 %v599_v4 }
 0x1c4   :  { %547 = vmatmul.mubr.msk.f32.gmra.mxu0 %vm166_vm2, %v273_v0 }
 0x280   :  { %v364_v2 = vpop.f32.mrf.mxu0 }
 0x281   :  { %v365_v6 = vadd.f32 %v364_v2, %v279_v3 }
 0x282   :  { %v366_v7 = vpop.f32.mrf.mxu0 }
 0x283   :  { %v367_v8 = vadd.f32 %v366_v7, %v279_v3  ;;  %v375_v14 = vmul.f32 0.5, %v365_v6 }
 0x284   :  { %v370_v11 = vpop.f32.mrf.mxu0 }
 0x285   :  { %v376_v12 = vmul.f32 0.5, %v367_v8  ;;  %v371_v13 = vadd.f32 %v370_v11, %v284_v10 }
 0x286   :  { %v372_v15 = vpop.f32.mrf.mxu0 }
 0x287   :  { %v377_v16 = vmul.f32 0.5, %v371_v13  ;;  %v373_v17 = vadd.f32 %v372_v15, %v284_v10  ;;  %566 = vtanh.f32 %v376_v12 }
 0x289   :  { %568 = vtanh.f32 %v377_v16  ;;  %v378_v4 = vmul.f32 0.5, %v373_v17 }
 0x28a   :  { %570 = vtanh.f32 %v375_v14 }
 0x28b   :  { %572 = vtanh.f32 %v378_v4 }
 0x28c   :  { %574 = vlog2.f32 %v482_v31 }
 0x294   :  { %v567_v18 = vpop.eup %566 }
 0x295   :  { %v384_v24 = vmul.f32 0.5, %v567_v18 }
 0x296   :  { %v569_v19 = vpop.eup %568 }
 0x297   :  { %v571_v20 = vpop.eup %570  ;;  %v385_v22 = vmul.f32 0.5, %v569_v19  ;;  %v388_v28 = vadd.f32 0.5, %v384_v24 }
 0x298   :  { %v573_v21 = vpop.eup %572  ;;  %v383_v25 = vmul.f32 0.5, %v571_v20 }
 0x299   :  { %v386_v23 = vmul.f32 0.5, %v573_v21  ;;  %v389_v27 = vadd.f32 0.5, %v385_v22  ;;  %v575_v32 = vpop.eup %574 }
 0x29a   :  { %v387_v29 = vadd.f32 0.5, %v383_v25  ;;  %v484_v33 = vmul.f32 0.6931472, %v575_v32 }
 0x29b   :  { %v390_v26 = vadd.f32 0.5, %v386_v23 }
 0x29c   :  { %v485_v36 = vmul.f32 -8.685889, %v484_v33 }
 0x29d   :  { %548 = vmatprep.subr.msk.mxu1 %vm66_vm0, %v390_v26 }
 0x29e   :  { %549 = vmatpush1.msk.msra.mxu1 %vm66_vm0, %v389_v27  ;;  %v490_v43 = vrot.slane %v485_v36, %v400_v34  ;;  %v494_v44 = vrot.slane %v485_v36, %v493_v37 }
 0x29f   :  { %441 = vmatprep.subr.mxu1 %v388_v28 }
 0x2a0   :  { %442 = vmatpush1.msra.mxu1 %v387_v29 }
 0x2a1   :  { %550 = vmatmul.mubr.msk.f32.vlgmr.msra.gmra.mxu1 %vm166_vm2, %v391_v30 }
 0x361   :  { %v477_v41 = vpop.f32.mrf.mxu1 }
 0x362   :  { %v478_v42 = vadd.f32 %v477_v41, %v401_v40 }
 0x363   :  { %v479_v46 = vpop.f32.mrf.mxu1 }
 0x364   :  { %v480_v47 = vadd.f32 %v479_v46, %v401_v40  ;;  %v497_v9 = vadd.f32 %v490_v43, %v478_v42 }
 0x366   :  { %v498_v48 = vadd.f32 %v494_v44, %v480_v47 }
 0x368   :  { %v501_v50 = vcombine.low %v497_v9, %v498_v48 }
 0x36a   :  { %v508_v51 = vrot.slane %v501_v50, %v507_v49 }
 0x36c   :  { %v515_v52 = vrot.slane %v508_v51, %v507_v49 }
 0x36e   :  { %521 = vst.msk [vmem:[#allocation3] sm:$0x3] %vm519_vm3, %v515_v52 }
 0x36f   :  { %587 = shalt.err (!%p584_p4)
}
 0x370   :  { %531 = dma.vmem_to_hbm [thread:$0]  %s529_s10, 32, %s742_s9, [#allocation4]  }
 0x371   :  { %596 = dma.done.wait [#allocation4], 32  }
 0x372   :  { %597 = vsyncadd [#allocation4], 4294967264 }
 0x373   :  { %535 = vsyncpa [#allocation4], 1 }

</bundles_post_ra>
